<compile_context>
chip_gen: v5e
topology: v5e:2x2
jax: 0.10.0
libtpu: 0.0.40
codegen_flags: <defaults>
</compile_context>

<pallas_src>
import functools

import jax
import jax.numpy as jnp
from jax.experimental import pallas as pl
from jax.experimental.pallas import tpu as pltpu


def _round_up(x, m):
    return ((x + m - 1) // m) * m


def _is_multi_tensorcore_chip():
    """True only for generations with >1 TensorCore per chip (v7x here)."""
    try:
        kind = jax.devices()[0].device_kind.lower()
    except Exception:
        return False
    return ("v7" in kind) or ("7x" in kind)


def _mlp_kernel(x_ref, w0_ref, b0_ref, w1_ref, b1_ref, w2_ref, b2_ref, out_ref):
    # Fused 3-layer MLP; all weights resident in VMEM for every batch tile.
    x = x_ref[...]
    if x.dtype != w0_ref.dtype:
        # use_bf16 path: z stays f32 in HBM; cast here (idle VPU slots).
        x = x.astype(w0_ref.dtype)
    h0 = jnp.dot(x, w0_ref[...], preferred_element_type=jnp.float32) + b0_ref[...]
    h0 = jnp.maximum(h0, 0.0)
    h1 = jnp.dot(h0.astype(w1_ref.dtype), w1_ref[...],
                 preferred_element_type=jnp.float32) + b1_ref[...]
    h1 = jnp.maximum(h1, 0.0)
    # w2_ref holds W2' = [I | W2 | 0], b2_ref holds b2' = [0 | b2 | 0], so this
    # single full-128-lane matmul emits the slab [ h1 | last | 0 ] directly:
    # no concatenate, no narrow-N MXU pass, one unmasked full-width store.
    out = jnp.dot(h1.astype(w2_ref.dtype), w2_ref[...],
                  preferred_element_type=jnp.float32) + b2_ref[...]
    out_ref[...] = out.astype(out_ref.dtype)


@functools.partial(jax.jit,
                   static_argnames=("batch_tile", "use_bf16", "out_dtype"))
def small_model_forward(z, params, batch_tile=4096, use_bf16=False,
                        out_dtype=jnp.float32):
    """z: [B, x_len] float32.  params: dict of (w0,b0,w1,b1,w2,b2) with weights
    stored as [in, out] and biases as [1, out].  Returns (pre_last, last)."""
    w0, b0 = params["w0"], params["b0"]
    w1, b1 = params["w1"], params["b1"]
    w2, b2 = params["w2"], params["b2"]

    B, x_len = z.shape
    h0_dim = w0.shape[1]
    h1_dim = w1.shape[1]
    class_len = w2.shape[1]
    out_dtype = jax.dtypes.canonicalize_dtype(out_dtype)
    out_width = _round_up(h1_dim + class_len, 128)

    # ---- identity-augmented final layer: W2' = [I | W2 | 0], b2' = [0 | b2 | 0].
    pad = out_width - h1_dim - class_len
    w2_aug = jnp.concatenate(
        [jnp.eye(h1_dim, dtype=jnp.float32),
         w2.astype(jnp.float32),
         jnp.zeros((h1_dim, pad), jnp.float32)], axis=1)
    b2_aug = jnp.concatenate(
        [jnp.zeros((1, h1_dim), jnp.float32),
         b2.astype(jnp.float32),
         jnp.zeros((1, pad), jnp.float32)], axis=1)

    if use_bf16:
        # Only the (tiny) weights are cast in the wrapper; z is cast inside the
        # kernel so no extra f32->bf16 XLA pass over z's HBM copy is emitted.
        w0 = w0.astype(jnp.bfloat16)
        w1 = w1.astype(jnp.bfloat16)
        w2_aug = w2_aug.astype(jnp.bfloat16)   # 1.0 / 0.0 are exact in bf16
    # Biases stay f32: they are added after the f32-accumulating dot.

    # ---- batch tile: multiple of 8, as large as the batch allows, clamped so
    # double-buffered z + slab + f32 intermediates stay within ~12 MiB (inside
    # the default scoped-VMEM limit of every listed generation, v5e included).
    bytes_per_row = (2 * z.dtype.itemsize * x_len            # z, double-buffered
                     + 2 * out_dtype.itemsize * out_width    # slab, double-buffered
                     + 4 * (h0_dim + h1_dim + out_width))    # f32 intermediates
    vmem_budget = 12 * 1024 * 1024
    max_tile = max(8, (vmem_budget // bytes_per_row) // 8 * 8)

    min_rows = _round_up(B, 8)
    tile = min(_round_up(batch_tile, 8), min_rows, max_tile)

    # v7x (2 TensorCores/chip): ensure the parallel grid has >= 2 steps so the
    # second core is not idle.  Skipped on single-TC v5e/v6e, where a forced
    # split only adds ~0.35us/step of overhead and an extra writeback DMA.
    if (_is_multi_tensorcore_chip() and min_rows > 8
            and (min_rows + tile - 1) // tile < 2):
        tile = max(8, _round_up((min_rows + 1) // 2, 8))

    num_tiles = (B + tile - 1) // tile
    padded_B = num_tiles * tile
    if padded_B != B:
        # Padded rows compute ReLU(b0)-style garbage and are sliced off below.
        z = jnp.pad(z, ((0, padded_B - B), (0, 0)))

    # Weights/biases are broadcast to every batch tile (index_map -> block (0,0)).
    def weight_spec(shape):
        return pl.BlockSpec(shape, lambda i: (0, 0))

    def lane_pad(n):
        return _round_up(n, 128)

    flops = 2 * padded_B * (x_len * h0_dim + h0_dim * h1_dim + h1_dim * out_width)
    # HBM arrays live in (8,128)-tiled layouts, so narrow last dims are
    # lane-padded; the slab writeback dominates.
    bytes_accessed = (
        z.dtype.itemsize * padded_B * lane_pad(x_len)                    # z read
        + w0.dtype.itemsize * (x_len * lane_pad(h0_dim)
                               + h0_dim * lane_pad(h1_dim))              # w0, w1
        + w2_aug.dtype.itemsize * h1_dim * out_width                     # W2'
        + 4 * (lane_pad(h0_dim) + lane_pad(h1_dim) + out_width)          # biases
        + out_dtype.itemsize * padded_B * out_width)                     # slab

    combined = pl.pallas_call(
        _mlp_kernel,
        out_shape=jax.ShapeDtypeStruct((padded_B, out_width), out_dtype),
        grid_spec=pltpu.PrefetchScalarGridSpec(
            num_scalar_prefetch=0,
            grid=(num_tiles,),
            in_specs=[
                # NOTE: pipeline_mode=pl.Buffered(3) on the z spec is a
                # candidate micro-opt for very large tiles; keep only if it
                # measures > 5 sigma on hardware.
                pl.BlockSpec((tile, x_len), lambda i: (i, 0)),   # z tile
                weight_spec((x_len, h0_dim)),                    # w0
                weight_spec((1, h0_dim)),                        # b0
                weight_spec((h0_dim, h1_dim)),                   # w1
                weight_spec((1, h1_dim)),                        # b1
                weight_spec((h1_dim, out_width)),                # W2' = [I|W2|0]
                weight_spec((1, out_width)),                     # b2' = [0|b2|0]
            ],
            out_specs=pl.BlockSpec((tile, out_width), lambda i: (i, 0)),
        ),
        compiler_params=pltpu.CompilerParams(
            dimension_semantics=("parallel",),
        ),
        cost_estimate=pl.CostEstimate(
            flops=flops, transcendentals=0, bytes_accessed=bytes_accessed),
    )(z, w0, b0, w1, b1, w2_aug, b2_aug)

    # Wrapper-side slicing of the lane-dense slab back into the two outputs.
    pre_last = combined[:B, :h1_dim]
    last = combined[:B, h1_dim:h1_dim + class_len]
    return pre_last, last


def init_params(key, x_len, class_param, class_len):
    """Deterministic init mirroring the nn.Linear shapes in small_model.__init__.

    class_param = [p0, p1]; layers: Linear(x_len,p0), Linear(p0,p1),
    Linear(p1, class_len).  Weights stored transposed: [in, out]."""
    assert len(class_param) == 2, "this script builds the 2-hidden-layer variant"
    p0, p1 = class_param
    dims = [(x_len, p0), (p0, p1), (p1, class_len)]
    params = {}
    for idx, (fan_in, fan_out) in enumerate(dims):
        key, kw, kb = jax.random.split(key, 3)
        bound = 1.0 / jnp.sqrt(jnp.float32(fan_in))
        params[f"w{idx}"] = jax.random.uniform(
            kw, (fan_in, fan_out), jnp.float32, -bound, bound)
        params[f"b{idx}"] = jax.random.uniform(
            kb, (1, fan_out), jnp.float32, -bound, bound)
    return params


def reference_forward(z, params):
    h0 = jnp.maximum(z @ params["w0"] + params["b0"], 0.0)
    h1 = jnp.maximum(h0 @ params["w1"] + params["b1"], 0.0)
    last = h1 @ params["w2"] + params["b2"]
    return h1, last


if __name__ == "__main__":
    # Small shapes consistent with the module: x_len=32, class_param=[64, 32],
    # class_len=8.  batch=12 exercises the padding path.
    batch, x_len = 12, 32
    class_param = [64, 32]
    class_len = 8

    key = jax.random.PRNGKey(0)
    key, kz = jax.random.split(key)
    z = jax.random.normal(kz, (batch, x_len), jnp.float32)
    params = init_params(key, x_len, class_param, class_len)

    ref_pre, ref_last = reference_forward(z, params)

    # f32 path (default).  Tolerance 1e-4: the identity columns of W2' route
    # pre_last through the MXU's multi-pass f32 path, which can differ from the
    # pure reference at the ~1e-5 level.
    pre_last, last = small_model_forward(z, params)
    pre_last = jax.block_until_ready(pre_last)
    last = jax.block_until_ready(last)
    assert pre_last.shape == (batch, class_param[-1])
    assert last.shape == (batch, class_len)
    assert jnp.allclose(pre_last, ref_pre, atol=1e-4, rtol=1e-4)
    assert jnp.allclose(last, ref_last, atol=1e-4, rtol=1e-4)

    # bf16 matmul-operand path (z cast inside the kernel) — loose tolerance.
    pre_bf, last_bf = small_model_forward(z, params, use_bf16=True)
    pre_bf = jax.block_until_ready(pre_bf)
    last_bf = jax.block_until_ready(last_bf)
    assert pre_bf.shape == (batch, class_param[-1])
    assert last_bf.shape == (batch, class_len)
    assert jnp.allclose(pre_bf, ref_pre, atol=1e-1, rtol=1e-1)
    assert jnp.allclose(last_bf, ref_last, atol=1e-1, rtol=1e-1)

    # bf16 output slab (halves the dominant writeback DMA) — loose tolerance.
    pre_o16, last_o16 = small_model_forward(
        z, params, use_bf16=True, out_dtype=jnp.bfloat16)
    pre_o16 = jax.block_until_ready(pre_o16)
    last_o16 = jax.block_until_ready(last_o16)
    assert pre_o16.dtype == jnp.bfloat16 and last_o16.dtype == jnp.bfloat16
    assert jnp.allclose(pre_o16.astype(jnp.float32), ref_pre, atol=1e-1, rtol=1e-1)
    assert jnp.allclose(last_o16.astype(jnp.float32), ref_last, atol=1e-1, rtol=1e-1)

    print("KERNEL_OK")
</pallas_src>

<mosaic_0001>
module attributes {stable_mosaic.version = 11 : i64} {
  func.func @_mlp_kernel(%arg0: i32, %arg1: memref<16x32xf32, #tpu.memory_space<vmem>>, %arg2: memref<32x64xf32, #tpu.memory_space<vmem>>, %arg3: memref<1x64xf32, #tpu.memory_space<vmem>>, %arg4: memref<64x32xf32, #tpu.memory_space<vmem>>, %arg5: memref<1x32xf32, #tpu.memory_space<vmem>>, %arg6: memref<32x128xf32, #tpu.memory_space<vmem>>, %arg7: memref<1x128xf32, #tpu.memory_space<vmem>>, %arg8: memref<16x128xf32, #tpu.memory_space<vmem>>) attributes {dimension_semantics = [#tpu.dimension_semantics<parallel>], iteration_bounds = array<i64: 1>, scalar_prefetch = 0 : i64, scratch_operands = 0 : i64, tpu.core_type = #tpu.core_type<tc>, window_params = [{transform_indices = @transform_0, window_bounds = array<i64: 16, 32>}, {pipeline_mode = #tpu.pipeline_mode<synchronous>, transform_indices = @transform_1, window_bounds = array<i64: 32, 64>}, {pipeline_mode = #tpu.pipeline_mode<synchronous>, transform_indices = @transform_2, window_bounds = array<i64: 1, 64>}, {pipeline_mode = #tpu.pipeline_mode<synchronous>, transform_indices = @transform_3, window_bounds = array<i64: 64, 32>}, {pipeline_mode = #tpu.pipeline_mode<synchronous>, transform_indices = @transform_4, window_bounds = array<i64: 1, 32>}, {pipeline_mode = #tpu.pipeline_mode<synchronous>, transform_indices = @transform_5, window_bounds = array<i64: 32, 128>}, {pipeline_mode = #tpu.pipeline_mode<synchronous>, transform_indices = @transform_6, window_bounds = array<i64: 1, 128>}, {transform_indices = @transform_7, window_bounds = array<i64: 16, 128>}]} {
    %c0 = arith.constant 0 : index
    %c0_0 = arith.constant 0 : index
    %0 = vector.load %arg1[%c0, %c0_0] : memref<16x32xf32, #tpu.memory_space<vmem>>, vector<16x32xf32>
    %c0_1 = arith.constant 0 : index
    %c0_2 = arith.constant 0 : index
    %1 = vector.load %arg2[%c0_1, %c0_2] : memref<32x64xf32, #tpu.memory_space<vmem>>, vector<32x64xf32>
    %cst = arith.constant dense<0.000000e+00> : vector<16x64xf32>
    %2 = tpu.matmul %0, %1, %cst {dimension_numbers = #tpu.dot_dimension_numbers<[1], [0], [0], [1], [0, 0, 1, 1], [], []>} : vector<16x32xf32>, vector<32x64xf32>, vector<16x64xf32> -> vector<16x64xf32>
    %c0_3 = arith.constant 0 : index
    %c0_4 = arith.constant 0 : index
    %3 = vector.load %arg3[%c0_3, %c0_4] : memref<1x64xf32, #tpu.memory_space<vmem>>, vector<1x64xf32>
    %4 = vector.broadcast %3 : vector<1x64xf32> to vector<16x64xf32>
    %5 = arith.addf %2, %4 : vector<16x64xf32>
    %cst_5 = arith.constant 0.000000e+00 : f32
    %6 = vector.broadcast %cst_5 : f32 to vector<16x64xf32>
    %7 = arith.maximumf %5, %6 : vector<16x64xf32>
    %c0_6 = arith.constant 0 : index
    %c0_7 = arith.constant 0 : index
    %8 = vector.load %arg4[%c0_6, %c0_7] : memref<64x32xf32, #tpu.memory_space<vmem>>, vector<64x32xf32>
    %cst_8 = arith.constant dense<0.000000e+00> : vector<16x32xf32>
    %9 = tpu.matmul %7, %8, %cst_8 {dimension_numbers = #tpu.dot_dimension_numbers<[1], [0], [0], [1], [0, 0, 1, 1], [], []>} : vector<16x64xf32>, vector<64x32xf32>, vector<16x32xf32> -> vector<16x32xf32>
    %c0_9 = arith.constant 0 : index
    %c0_10 = arith.constant 0 : index
    %10 = vector.load %arg5[%c0_9, %c0_10] : memref<1x32xf32, #tpu.memory_space<vmem>>, vector<1x32xf32>
    %11 = vector.broadcast %10 : vector<1x32xf32> to vector<16x32xf32>
    %12 = arith.addf %9, %11 : vector<16x32xf32>
    %cst_11 = arith.constant 0.000000e+00 : f32
    %13 = vector.broadcast %cst_11 : f32 to vector<16x32xf32>
    %14 = arith.maximumf %12, %13 : vector<16x32xf32>
    %c0_12 = arith.constant 0 : index
    %c0_13 = arith.constant 0 : index
    %15 = vector.load %arg6[%c0_12, %c0_13] : memref<32x128xf32, #tpu.memory_space<vmem>>, vector<32x128xf32>
    %cst_14 = arith.constant dense<0.000000e+00> : vector<16x128xf32>
    %16 = tpu.matmul %14, %15, %cst_14 {dimension_numbers = #tpu.dot_dimension_numbers<[1], [0], [0], [1], [0, 0, 1, 1], [], []>} : vector<16x32xf32>, vector<32x128xf32>, vector<16x128xf32> -> vector<16x128xf32>
    %c0_15 = arith.constant 0 : index
    %c0_16 = arith.constant 0 : index
    %17 = vector.load %arg7[%c0_15, %c0_16] : memref<1x128xf32, #tpu.memory_space<vmem>>, vector<1x128xf32>
    %18 = vector.broadcast %17 : vector<1x128xf32> to vector<16x128xf32>
    %19 = arith.addf %16, %18 : vector<16x128xf32>
    %c0_17 = arith.constant 0 : index
    %c0_18 = arith.constant 0 : index
    %20 = vector.load %arg8[%c0_17, %c0_18] : memref<16x128xf32, #tpu.memory_space<vmem>>, vector<16x128xf32>
    tpu.vector_store %arg8[%c0_17, %c0_18], %19 {strides = array<i32>} : memref<16x128xf32, #tpu.memory_space<vmem>>, vector<16x128xf32>,
    return
  }
  func.func @transform_0(%arg0: i32) -> (i32, i32) {
    %c0_i32 = arith.constant 0 : i32
    %c0_i32_0 = arith.constant 0 : i32
    return %arg0, %c0_i32 : i32, i32
  }
  func.func @transform_1(%arg0: i32) -> (i32, i32) {
    %c0_i32 = arith.constant 0 : i32
    %c0_i32_0 = arith.constant 0 : i32
    %c0_i32_1 = arith.constant 0 : i32
    return %c0_i32, %c0_i32_0 : i32, i32
  }
  func.func @transform_2(%arg0: i32) -> (i32, i32) {
    %c0_i32 = arith.constant 0 : i32
    %c0_i32_0 = arith.constant 0 : i32
    %c0_i32_1 = arith.constant 0 : i32
    return %c0_i32, %c0_i32_0 : i32, i32
  }
  func.func @transform_3(%arg0: i32) -> (i32, i32) {
    %c0_i32 = arith.constant 0 : i32
    %c0_i32_0 = arith.constant 0 : i32
    %c0_i32_1 = arith.constant 0 : i32
    return %c0_i32, %c0_i32_0 : i32, i32
  }
  func.func @transform_4(%arg0: i32) -> (i32, i32) {
    %c0_i32 = arith.constant 0 : i32
    %c0_i32_0 = arith.constant 0 : i32
    %c0_i32_1 = arith.constant 0 : i32
    return %c0_i32, %c0_i32_0 : i32, i32
  }
  func.func @transform_5(%arg0: i32) -> (i32, i32) {
    %c0_i32 = arith.constant 0 : i32
    %c0_i32_0 = arith.constant 0 : i32
    %c0_i32_1 = arith.constant 0 : i32
    return %c0_i32, %c0_i32_0 : i32, i32
  }
  func.func @transform_6(%arg0: i32) -> (i32, i32) {
    %c0_i32 = arith.constant 0 : i32
    %c0_i32_0 = arith.constant 0 : i32
    %c0_i32_1 = arith.constant 0 : i32
    return %c0_i32, %c0_i32_0 : i32, i32
  }
  func.func @transform_7(%arg0: i32) -> (i32, i32) {
    %c0_i32 = arith.constant 0 : i32
    %c0_i32_0 = arith.constant 0 : i32
    return %arg0, %c0_i32 : i32, i32
  }
}

</mosaic_0001>

<bundles_post_ra>
// kernel: small_model_forward.1
= control target key start
LH: loop header
LB: loop body
LE: loop exit
PB: predicated region body
PF: predicated region fallthrough
CT: control target
= control target key end

     0   :  { %vm36_vm0 = vcmask 261120   ;;  %vm80_vm1 = vcmask 523264   ;;  %s285_s1 = inlined_call_operand.vmem [shape: f32[32,64], index: 1, kind: input, shape index: {}]   ;;  %s286_s3 = inlined_call_operand.vmem [shape: f32[64,32], index: 3, kind: input, shape index: {}]   ;;  %s287_s0 = inlined_call_operand.vmem [shape: f32[16,32], index: 0, kind: input, shape index: {}]   ;;  %s288_s2 = inlined_call_operand.vmem [shape: f32[1,64], index: 2, kind: input, shape index: {}]   ;;  %s289_s4 = inlined_call_operand.vmem [shape: f32[1,32], index: 4, kind: input, shape index: {}]   ;;  %s290_s5 = inlined_call_operand.vmem [shape: f32[32,128], index: 5, kind: input, shape index: {}]   ;;  %s291_s6 = inlined_call_operand.vmem [shape: f32[1,128], index: 6, kind: input, shape index: {}]   ;;  %s292_s7 = inlined_call_operand.vmem [shape: f32[16,128], index: 7, kind: output, shape index: {}]  }
   0x1   :  { %v31_v0 = vld [vmem:[%s285_s1 + $0x18] sm:$0xff]  ;;  %v30_v1 = vld [vmem:[%s285_s1 + $0x10] sm:$0xff]  ;;  %v29_v2 = vld [vmem:[%s285_s1 + $0x8] sm:$0xff] }
   0x2   :  { %55 = vmatpush.msra.mxu0 %v31_v0  ;;  %v75_v3 = vld [vmem:[%s286_s3 + $0x38] sm:$0xff]  ;;  %v74_v4 = vld [vmem:[%s286_s3 + $0x30] sm:$0xff]  ;;  %v28_v5 = vld [vmem:[%s285_s1] sm:$0xff] }
   0x3   :  { %95 = vmatpush.msra.mxu1 %v75_v3  ;;  %v73_v6 = vld [vmem:[%s286_s3 + $0x28] sm:$0xff]  ;;  %161 = vmatpush.msra.mxu3 %v75_v3  ;;  %v26_v7 = vld [vmem:[%s287_s0] sm:$0xff]  ;;  %v71_v9 = vld [vmem:[%s286_s3 + $0x18] sm:$0xff] }
   0x4   :  { %56 = vmatpush.msra.mxu0 %v30_v1  ;;  %v72_v8 = vld [vmem:[%s286_s3 + $0x20] sm:$0xff]  ;;  %v27_v10 = vld [vmem:[%s287_s0 + $0x8] sm:$0xff]  ;;  %v70_v11 = vld [vmem:[%s286_s3 + $0x10] sm:$0xff] }
   0x5   :  { %96 = vmatpush.msra.mxu1 %v74_v4  ;;  %162 = vmatpush.msra.mxu3 %v74_v4  ;;  %v69_v12 = vld [vmem:[%s286_s3 + $0x8] sm:$0xff]  ;;  %v68_v13 = vld [vmem:[%s286_s3] sm:$0xff]  ;;  %v115_v14 = vld [vmem:[%s290_s5 + $0x18] sm:$0xff] }
   0x6   :  { %57 = vmatpush.msra.mxu0 %v29_v2  ;;  %138 = vmatpush.msra.mxu2 %v115_v14  ;;  %v169_v15 = vld [vmem:[%s288_s2] ss:$0 sm:$0xff]  ;;  %v114_v22 = vld [vmem:[%s290_s5 + $0x10] sm:$0xff]  ;;  %v113_v23 = vld [vmem:[%s290_s5 + $0x8] sm:$0xff] }
   0x7   :  { %97 = vmatpush.msra.mxu1 %v73_v6  ;;  %163 = vmatpush.msra.mxu3 %v73_v6  ;;  %v112_v24 = vld [vmem:[%s290_s5] sm:$0xff] }
   0x8   :  { %58 = vmatpush.msra.mxu0 %v28_v5  ;;  %139 = vmatpush.msra.mxu2 %v114_v22  ;;  %v170_v25 = vld [vmem:[%s289_s4] ss:$0 sm:$0xff] }
   0x9   :  { %155 = vmatmul.msk.f32.vlgmr.msra.gmra.mxu0 %vm36_vm0, %v26_v7  ;;  %98 = vmatpush.msra.mxu1 %v72_v8  ;;  %v171_v32 = vld [vmem:[%s291_s6] ss:$0 sm:$0xff] }
   0xa   :  { %164 = vmatpush.msra.mxu3 %v72_v8  ;;  %140 = vmatpush.msra.mxu2 %v113_v23 }
   0xb   :  { %99 = vmatpush.msra.mxu1 %v71_v9 }
   0xc   :  { %165 = vmatpush.msra.mxu3 %v71_v9  ;;  %141 = vmatpush.msra.mxu2 %v112_v24 }
   0xd   :  { %100 = vmatpush.msra.mxu1 %v70_v11 }
   0xe   :  { %166 = vmatpush.msra.mxu3 %v70_v11 }
   0xf   :  { %101 = vmatpush.msra.mxu1 %v69_v12 }
  0x10   :  { %167 = vmatpush.msra.mxu3 %v69_v12 }
  0x11   :  { %156 = vmatmul.msk.f32.gmra.mxu0 %vm36_vm0, %v27_v10  ;;  %102 = vmatpush.msra.mxu1 %v68_v13 }
  0x12   :  { %168 = vmatpush.msra.mxu3 %v68_v13 }
  0x86   :  { %v60_v16 = vpop.f32.mrf.mxu0 }
  0x87   :  { %v61_v17 = vadd.f32 %v169_v15, %v60_v16 }
  0x89   :  { %v66_v18 = vmax.f32 %v61_v17, 0.0 }
  0x8b   :  { %157 = vmatmul.msk.f32.vlgmr.msra.gmra.mxu1 %vm80_vm1, %v66_v18 }
  0x8e   :  { %v63_v19 = vpop.f32.mrf.mxu0 }
  0x8f   :  { %v64_v20 = vadd.f32 %v169_v15, %v63_v19 }
  0x91   :  { %v67_v21 = vmax.f32 %v64_v20, 0.0 }
  0x93   :  { %158 = vmatmul.msk.f32.vlgmr.msra.gmra.mxu3 %vm80_vm1, %v67_v21 }
 0x108   :  { %v104_v26 = vpop.f32.mrf.mxu1 }
 0x109   :  { %v105_v27 = vadd.f32 %v170_v25, %v104_v26 }
 0x10b   :  { %v110_v28 = vmax.f32 %v105_v27, 0.0 }
 0x10d   :  { %159 = vmatmul.msk.f32.vlgmr.msra.gmra.mxu2 %vm36_vm0, %v110_v28 }
 0x116   :  { %v107_v29 = vpop.f32.mrf.mxu3 }
 0x117   :  { %v108_v30 = vadd.f32 %v170_v25, %v107_v29 }
 0x119   :  { %v111_v31 = vmax.f32 %v108_v30, 0.0 }
 0x11b   :  { %160 = vmatmul.msk.f32.gmra.mxu2 %vm36_vm0, %v111_v31 }
 0x190   :  { %v143_v33 = vpop.f32.mrf.mxu2 }
 0x191   :  { %v144_v34 = vadd.f32 %v171_v32, %v143_v33 }
 0x193   :  { %149 = vst [vmem:[%s292_s7] sm:$0xff] %v144_v34 }
 0x19e   :  { %v146_v35 = vpop.f32.mrf.mxu2 }
 0x19f   :  { %v147_v36 = vadd.f32 %v171_v32, %v146_v35 }
 0x1a1   :  { %150 = vst [vmem:[%s292_s7 + $0x8] sm:$0xff] %v147_v36 }

</bundles_post_ra>
